<compile_context>
chip_gen: v6e
topology: v6e:2x2x1
jax: 0.10.0
libtpu: 0.0.40
codegen_flags: <defaults>
</compile_context>

<pallas_src>
import jax
import jax.numpy as jnp
from jax.experimental import pallas as pl
from jax.experimental.pallas import tpu as pltpu

TOKEN_LENGTH = 32  # vocab_size in the PyTorch module


def _round_up(x, m):
    return (x + m - 1) // m * m


def _binary_embed_kernel(x_ref, e_ref, tabf_ref, rowsum_ref, emb_ref, logit_ref):
    # x_ref:      (tn, L)     binary 0/1 input tile (f32)
    # e_ref:      (L, L*H)    bf16 expansion matrix, E[l, l*H + h] = 1
    # tabf_ref:   (1, L*H)    flattened embedding rows (f32), VMEM-resident
    # rowsum_ref: (1, L)      per-row sum of embedding table (f32), VMEM-resident
    # emb_ref:    (tn, L*H)   lane-dense embeddings output
    # logit_ref:  (tn, L)     hidden-dim sums
    amp = x_ref[...] * 2.0 - 1.0                                  # exact ±1 (VPU)
    # MXU lane expansion: sgn[n, l*H + h] = amp[n, l].  Operands are 0/±1 in bf16,
    # exactly one nonzero term per output column -> exact result, lane-dense layout.
    sgn = jnp.dot(amp.astype(jnp.bfloat16), e_ref[...],
                  preferred_element_type=jnp.float32)             # (tn, L*H)
    emb_ref[...] = (sgn * tabf_ref[...]).astype(emb_ref.dtype)    # one VPU vmul + full vst
    # logit[n, l] = sum_h amp[n,l]*tab[l,h] = amp[n,l] * rowsum[l]  (sign flip is exact)
    logit_ref[...] = (amp * rowsum_ref[...]).astype(logit_ref.dtype)


def binary_embedding(binary_input, embed_table, *, tile_n=512, out_dtype=jnp.float32):
    """binary_input: (B, S, L) or (S, L) of 0/1; embed_table: (vocab, H)."""
    x = jnp.asarray(binary_input)
    if x.ndim == 3:
        B, S, L = x.shape
        x2d = x.reshape(B * S, L)
        batched = True
    else:
        S, L = x.shape
        B = 1
        x2d = x
        batched = False

    H = embed_table.shape[1]
    N = x2d.shape[0]

    tab = embed_table[:L].astype(jnp.float32)                      # rows arange(L): (L, H)
    tab_flat = tab.reshape(1, L * H)                               # (1, L*H)
    rowsum = jnp.sum(tab, axis=1).reshape(1, L)                    # (1, L)
    # Expansion matrix E[l, l*H + h] = 1  (kron(I_L, ones(1, H))); exact in bf16.
    expand = jnp.repeat(jnp.eye(L, dtype=jnp.float32), H, axis=1).astype(jnp.bfloat16)

    # Row tiling: biggest tile that amortizes per-step overhead (~0.35 µs/step),
    # capped at 1024 so double-buffered (tn, L*H) f32 output tiles stay small on v7x.
    tile_n = max(8, _round_up(int(tile_n), 8))
    tile_n = min(tile_n, 1024)
    tn = min(tile_n, _round_up(max(N, 1), 8))
    n_pad = _round_up(max(N, 1), tn)

    x2d_f = x2d.astype(jnp.float32)
    if n_pad != N:
        x2d_f = jnp.pad(x2d_f, ((0, n_pad - N), (0, 0)))

    grid = (n_pad // tn,)

    emb_flat, logit = pl.pallas_call(
        _binary_embed_kernel,
        out_shape=(
            jax.ShapeDtypeStruct((n_pad, L * H), out_dtype),
            jax.ShapeDtypeStruct((n_pad, L), out_dtype),
        ),
        grid_spec=pltpu.PrefetchScalarGridSpec(
            num_scalar_prefetch=0,
            grid=grid,
            in_specs=[
                pl.BlockSpec((tn, L), lambda i: (i, 0)),        # binary input tile
                pl.BlockSpec((L, L * H), lambda i: (0, 0)),     # expansion matrix (resident)
                pl.BlockSpec((1, L * H), lambda i: (0, 0)),     # flattened table (resident)
                pl.BlockSpec((1, L), lambda i: (0, 0)),         # row sums (resident)
            ],
            out_specs=[
                pl.BlockSpec((tn, L * H), lambda i: (i, 0)),    # lane-dense emb
                pl.BlockSpec((tn, L), lambda i: (i, 0)),
            ],
        ),
        compiler_params=pltpu.CompilerParams(
            dimension_semantics=("parallel",),
        ),
    )(x2d_f, expand, tab_flat, rowsum)

    emb = emb_flat[:N].reshape(N, L, H)
    logit = logit[:N, :, None]                                     # keepdim=True

    # PyTorch only reshapes back when batch_size > 1 (3-D input with B == 1 stays flat).
    if batched and B > 1:
        emb = emb.reshape(B, S, L, H)
        logit = logit.reshape(B, S, L, 1)
    return emb, logit


if __name__ == "__main__":
    key = jax.random.PRNGKey(0)
    k_x, k_w = jax.random.split(key)

    batch, seq, bin_len = 2, 8, TOKEN_LENGTH   # bin_len must be <= vocab_size (32)
    hidden = 32

    # Deterministic params: nn.Embedding default init is N(0, 1).
    embed_table = jax.random.normal(k_w, (TOKEN_LENGTH, hidden), dtype=jnp.float32)

    # Binary (0/1) input, float32.
    binary_input = jax.random.bernoulli(k_x, 0.5, (batch, seq, bin_len)).astype(jnp.float32)

    emb, logit = binary_embedding(binary_input, embed_table)
    emb, logit = jax.block_until_ready((emb, logit))

    # Reference check (plain JAX) — same math as the PyTorch forward.
    amp_ref = binary_input * 2.0 - 1.0
    emb_ref = amp_ref[..., None] * embed_table[:bin_len][None, None, :, :]
    logit_ref = jnp.sum(emb_ref, axis=-1, keepdims=True)
    assert emb.shape == (batch, seq, bin_len, hidden)
    assert logit.shape == (batch, seq, bin_len, 1)
    assert jnp.allclose(emb, emb_ref, atol=1e-5)
    assert jnp.allclose(logit, logit_ref, atol=1e-4)

    print("KERNEL_OK")
</pallas_src>

<mosaic_0001>
module attributes {stable_mosaic.version = 11 : i64} {
  func.func @_binary_embed_kernel(%arg0: i32, %arg1: memref<16x32xf32, #tpu.memory_space<vmem>>, %arg2: memref<32x1024xbf16, #tpu.memory_space<vmem>>, %arg3: memref<1x1024xf32, #tpu.memory_space<vmem>>, %arg4: memref<1x32xf32, #tpu.memory_space<vmem>>, %arg5: memref<16x1024xf32, #tpu.memory_space<vmem>>, %arg6: memref<16x32xf32, #tpu.memory_space<vmem>>) attributes {dimension_semantics = [#tpu.dimension_semantics<parallel>], iteration_bounds = array<i64: 1>, scalar_prefetch = 0 : i64, scratch_operands = 0 : i64, tpu.core_type = #tpu.core_type<tc>, window_params = [{transform_indices = @transform_0, window_bounds = array<i64: 16, 32>}, {pipeline_mode = #tpu.pipeline_mode<synchronous>, transform_indices = @transform_1, window_bounds = array<i64: 32, 1024>}, {pipeline_mode = #tpu.pipeline_mode<synchronous>, transform_indices = @transform_2, window_bounds = array<i64: 1, 1024>}, {pipeline_mode = #tpu.pipeline_mode<synchronous>, transform_indices = @transform_3, window_bounds = array<i64: 1, 32>}, {transform_indices = @transform_4, window_bounds = array<i64: 16, 1024>}, {transform_indices = @transform_5, window_bounds = array<i64: 16, 32>}]} {
    %c0 = arith.constant 0 : index
    %c0_0 = arith.constant 0 : index
    %0 = vector.load %arg1[%c0, %c0_0] : memref<16x32xf32, #tpu.memory_space<vmem>>, vector<16x32xf32>
    %cst = arith.constant 2.000000e+00 : f32
    %1 = vector.broadcast %cst : f32 to vector<16x32xf32>
    %2 = arith.mulf %0, %1 : vector<16x32xf32>
    %cst_1 = arith.constant 1.000000e+00 : f32
    %3 = vector.broadcast %cst_1 : f32 to vector<16x32xf32>
    %4 = arith.subf %2, %3 : vector<16x32xf32>
    %5 = arith.truncf %4 : vector<16x32xf32> to vector<16x32xbf16>
    %c0_2 = arith.constant 0 : index
    %c0_3 = arith.constant 0 : index
    %6 = vector.load %arg2[%c0_2, %c0_3] : memref<32x1024xbf16, #tpu.memory_space<vmem>>, vector<32x1024xbf16>
    %cst_4 = arith.constant dense<0.000000e+00> : vector<16x1024xf32>
    %7 = tpu.matmul %5, %6, %cst_4 {dimension_numbers = #tpu.dot_dimension_numbers<[1], [0], [0], [1], [0, 0, 1, 1], [], []>} : vector<16x32xbf16>, vector<32x1024xbf16>, vector<16x1024xf32> -> vector<16x1024xf32>
    %c0_5 = arith.constant 0 : index
    %c0_6 = arith.constant 0 : index
    %8 = vector.load %arg3[%c0_5, %c0_6] : memref<1x1024xf32, #tpu.memory_space<vmem>>, vector<1x1024xf32>
    %9 = vector.broadcast %8 : vector<1x1024xf32> to vector<16x1024xf32>
    %10 = arith.mulf %7, %9 : vector<16x1024xf32>
    %c0_7 = arith.constant 0 : index
    %c0_8 = arith.constant 0 : index
    %11 = vector.load %arg5[%c0_7, %c0_8] : memref<16x1024xf32, #tpu.memory_space<vmem>>, vector<16x1024xf32>
    tpu.vector_store %arg5[%c0_7, %c0_8], %10 {strides = array<i32>} : memref<16x1024xf32, #tpu.memory_space<vmem>>, vector<16x1024xf32>,
    %c0_9 = arith.constant 0 : index
    %c0_10 = arith.constant 0 : index
    %12 = vector.load %arg4[%c0_9, %c0_10] : memref<1x32xf32, #tpu.memory_space<vmem>>, vector<1x32xf32>
    %13 = vector.broadcast %12 : vector<1x32xf32> to vector<16x32xf32>
    %14 = arith.mulf %4, %13 : vector<16x32xf32>
    %c0_11 = arith.constant 0 : index
    %c0_12 = arith.constant 0 : index
    %15 = vector.load %arg6[%c0_11, %c0_12] : memref<16x32xf32, #tpu.memory_space<vmem>>, vector<16x32xf32>
    tpu.vector_store %arg6[%c0_11, %c0_12], %14 {strides = array<i32>} : memref<16x32xf32, #tpu.memory_space<vmem>>, vector<16x32xf32>,
    return
  }
  func.func @transform_0(%arg0: i32) -> (i32, i32) {
    %c0_i32 = arith.constant 0 : i32
    %c0_i32_0 = arith.constant 0 : i32
    return %arg0, %c0_i32 : i32, i32
  }
  func.func @transform_1(%arg0: i32) -> (i32, i32) {
    %c0_i32 = arith.constant 0 : i32
    %c0_i32_0 = arith.constant 0 : i32
    %c0_i32_1 = arith.constant 0 : i32
    return %c0_i32, %c0_i32_0 : i32, i32
  }
  func.func @transform_2(%arg0: i32) -> (i32, i32) {
    %c0_i32 = arith.constant 0 : i32
    %c0_i32_0 = arith.constant 0 : i32
    %c0_i32_1 = arith.constant 0 : i32
    return %c0_i32, %c0_i32_0 : i32, i32
  }
  func.func @transform_3(%arg0: i32) -> (i32, i32) {
    %c0_i32 = arith.constant 0 : i32
    %c0_i32_0 = arith.constant 0 : i32
    %c0_i32_1 = arith.constant 0 : i32
    return %c0_i32, %c0_i32_0 : i32, i32
  }
  func.func @transform_4(%arg0: i32) -> (i32, i32) {
    %c0_i32 = arith.constant 0 : i32
    %c0_i32_0 = arith.constant 0 : i32
    return %arg0, %c0_i32 : i32, i32
  }
  func.func @transform_5(%arg0: i32) -> (i32, i32) {
    %c0_i32 = arith.constant 0 : i32
    %c0_i32_0 = arith.constant 0 : i32
    return %arg0, %c0_i32 : i32, i32
  }
}

</mosaic_0001>

<bundles_post_ra>
// kernel: tpu_custom_call.1
= control target key start
LH: loop header
LB: loop body
LE: loop exit
PB: predicated region body
PF: predicated region fallthrough
CT: control target
= control target key end

     0   :  { %11 = vsyncpa [#allocation3], 0  ;;  %s674_s0 = inlined_call_operand.hbm [shape: f32[16,32], index: 0, kind: input, shape index: {}]   ;;  %s675_s1 = inlined_call_operand.hbm [shape: bf16[32,1024], index: 1, kind: input, shape index: {}]   ;;  %s676_s2 = inlined_call_operand.hbm [shape: f32[1,1024], index: 2, kind: input, shape index: {}]   ;;  %s677_s3 = inlined_call_operand.vmem [shape: f32[1,32], index: 3, kind: input, shape index: {}]   ;;  %s678_s4 = inlined_call_operand.hbm [shape: f32[16,1024], index: 4, kind: output, shape index: {0}]   ;;  %s679_s5 = inlined_call_operand.hbm [shape: f32[16,32], index: 5, kind: output, shape index: {1}]  }
   0x1   :  { %12 = vsyncpa [#allocation6], 0 }
   0x2   :  { %13 = vsyncpa [#allocation4], 0 }
   0x3   :  { %14 = vsyncpa [#allocation10], 0  ;;  %s602_s18 = smov [#allocation5]  }
   0x4   :  { %s32_s19 = sshll.u32 %s602_s18, 4  ;;  %s33_s19 = int_to_ptr.vmem [resolvable:$true] %s32_s19 }
   0x5   :  { %s502_s20 = scalar_lea.vmem %s33_s19, 2048  ;;  %p507_p1 = scmp.lt.s32.totalorder %s33_s19, %s33_s19 }
   0x6   :  { %p503_p0 = scmp.ne.s32.totalorder %s33_s19, %s502_s20  ;;  %p508_p2 = scmp.lt.s32.totalorder %s502_s20, %s502_s20 }
   0x8   :  { %p509_p3 = por %p508_p2, %p507_p1 }
   0xa   :  { %p510_p4 = pnand %p509_p3, %p503_p0 }
   0xc   :  { %513 = shalt.err (!%p510_p4)
}
   0xd   :  { %s603_s21 = smov 512   ;;  %s604_s22 = smov 32  }
   0xe   :  { %38 = dma.hbm_to_vmem [thread:$0]  %s675_s1, 2048, %s33_s19, [#allocation6], %s603_s21, %s603_s21, %s604_s22  }
   0xf   :  { %s605_s25 = smov [#allocation2]  }
  0x10   :  { %s20_s26 = sshll.u32 %s605_s25, 4  ;;  %s21_s26 = int_to_ptr.vmem [resolvable:$true] %s20_s26 }
  0x11   :  { %s522_s27 = scalar_lea.vmem %s21_s26, 256  ;;  %p527_p6 = scmp.lt.s32.totalorder %s21_s26, %s21_s26 }
  0x12   :  { %p523_p5 = scmp.ne.s32.totalorder %s21_s26, %s522_s27  ;;  %p528_p7 = scmp.lt.s32.totalorder %s522_s27, %s522_s27 }
  0x14   :  { %p529_p8 = por %p528_p7, %p527_p6 }
  0x16   :  { %p530_p9 = pnand %p529_p8, %p523_p5 }
  0x18   :  { %533 = shalt.err (!%p530_p9)
}
  0x19   :  { %s606_s28 = smov 128   ;;  %s607_s29 = smov 8  }
  0x1a   :  { %26 = dma.hbm_to_vmem [thread:$0]  %s674_s0, 256, %s21_s26, [#allocation3], %s606_s28, %s606_s28, %s607_s29  }
  0x1b   :  { %s608_s1 = smov [#allocation7]  }
  0x1c   :  { %s45_s7 = sshll.u32 %s608_s1, 4  ;;  %s46_s7 = int_to_ptr.vmem [resolvable:$true] %s45_s7 }
  0x1d   :  { %s542_s8 = scalar_lea.vmem %s46_s7, 128  ;;  %p547_p11 = scmp.lt.s32.totalorder %s46_s7, %s46_s7 }
  0x1e   :  { %p543_p10 = scmp.ne.s32.totalorder %s46_s7, %s542_s8  ;;  %p548_p12 = scmp.lt.s32.totalorder %s542_s8, %s542_s8 }
  0x20   :  { %p549_p13 = por %p548_p12, %p547_p11 }
  0x22   :  { %p550_p0 = pnand %p549_p13, %p543_p10 }
  0x24   :  { %553 = shalt.err (!%p550_p0)
}
  0x25   :  { %48 = dma.hbm_to_vmem [thread:$0]  %s676_s2, 128, %s46_s7, [#allocation6]  }
  0x26   :  { %594 = dma.done.wait [#allocation3], 256  }
  0x27   :  { %595 = vsyncadd [#allocation3], 4294967040 }
  0x28   :  { %596 = dma.done.wait [#allocation6], 2176  }
  0x29   :  { %597 = vsyncadd [#allocation6], 4294965120  ;;  %v609_v0 = vmov 0   ;;  %v76_v1 = vld [vmem:[#allocation5 + $0x40] sm:$0xff]  ;;  %v77_v3 = vld [vmem:[#allocation5 + $0x48] sm:$0xff]  ;;  %vm164_vm0 = vcmask 261120  }
  0x2a   :  { %200 = vmatprep.mubr.bf16.mxu0 %v609_v0  ;;  %243 = vmatprep.mubr.bf16.mxu1 %v609_v0  ;;  %v80_v2 = vld [vmem:[#allocation5 + $0x60] sm:$0xff]  ;;  %v81_v5 = vld [vmem:[#allocation5 + $0x68] sm:$0xff]  ;;  %v61_v14 = vld [vmem:[#allocation2] sm:$0xff]  ;;  %s610_s11 = smov [#allocation9]  }
  0x2b   :  { %v470_v4 = vcombine.high %v76_v1, %v80_v2  ;;  %v469_v6 = vcombine.low %v76_v1, %v80_v2  ;;  %v68_v7 = vld [vmem:[#allocation5] sm:$0xff]  ;;  %v472_v9 = vcombine.high %v77_v3, %v81_v5  ;;  %v471_v10 = vcombine.low %v77_v3, %v81_v5  ;;  %v69_v12 = vld [vmem:[#allocation5 + $0x8] sm:$0xff]  ;;  %v62_v16 = vld [vmem:[#allocation2 + $0x8] sm:$0xff]  ;;  %s442_s12 = sshll.u32 %s610_s11, 4  ;;  %s443_s12 = int_to_ptr.vmem [resolvable:$true] %s442_s12 }
  0x2c   :  { %v72_v8 = vld [vmem:[#allocation5 + $0x20] sm:$0xff]  ;;  %v73_v13 = vld [vmem:[#allocation5 + $0x28] sm:$0xff]  ;;  %v63_v17 = vmul.f32 2.0, %v61_v14  ;;  %v78_v18 = vld [vmem:[#allocation5 + $0x50] sm:$0xff]  ;;  %v64_v21 = vmul.f32 2.0, %v62_v16  ;;  %s554_s13 = scalar_lea.vmem %s443_s12, 256  ;;  %p559_p2 = scmp.lt.s32.totalorder %s443_s12, %s443_s12 }
  0x2d   :  { %v462_v11 = vcombine.high %v68_v7, %v72_v8  ;;  %180 = vmatprep.subr.bf16.mxu0 %v470_v4  ;;  %v464_v15 = vcombine.high %v69_v12, %v73_v13  ;;  %v82_v19 = vld [vmem:[#allocation5 + $0x70] sm:$0xff]  ;;  %223 = vmatprep.subr.bf16.mxu1 %v472_v9  ;;  %v461_v20 = vcombine.low %v68_v7, %v72_v8  ;;  %v79_v22 = vld [vmem:[#allocation5 + $0x58] sm:$0xff]  ;;  %p555_p1 = scmp.ne.s32.totalorder %s443_s12, %s554_s13  ;;  %p560_p3 = scmp.lt.s32.totalorder %s554_s13, %s554_s13 }
  0x2e   :  { %181 = vmatpush1.bf16.msra.mxu0 %v469_v6  ;;  %v83_v23 = vld [vmem:[#allocation5 + $0x78] sm:$0xff]  ;;  %224 = vmatpush1.bf16.msra.mxu1 %v471_v10  ;;  %v463_v24 = vcombine.low %v69_v12, %v73_v13  ;;  %v459_v25 = vadd.f32 -1.0, %v63_v17  ;;  %v474_v26 = vcombine.high %v78_v18, %v82_v19  ;;  %v460_v27 = vadd.f32 -1.0, %v64_v21  ;;  %v70_v29 = vld [vmem:[#allocation5 + $0x10] sm:$0xff] }
  0x2f   :  { %182 = vmatprep.subr.bf16.mxu0 %v462_v11  ;;  %225 = vmatprep.subr.bf16.mxu1 %v464_v15  ;;  %v476_v28 = vcombine.high %v79_v22, %v83_v23  ;;  %v74_v30 = vld [vmem:[#allocation5 + $0x30] sm:$0xff]  ;;  %v71_v31 = vld [vmem:[#allocation5 + $0x18] sm:$0xff]  ;;  %v473_v34 = vcombine.low %v78_v18, %v82_v19  ;;  %v475_v35 = vcombine.low %v79_v22, %v83_v23  ;;  %p561_p4 = por %p560_p3, %p559_p2 }
  0x30   :  { %v75_v32 = vld [vmem:[#allocation5 + $0x38] sm:$0xff]  ;;  %v67_v33 = vpack.c.bf16 %v460_v27, %v459_v25  ;;  %v466_v36 = vcombine.high %v70_v29, %v74_v30  ;;  %v465_v38 = vcombine.low %v70_v29, %v74_v30  ;;  %v481_v40 = vld [vmem:[%s677_s3] ss:$0 sm:$0xff] }
  0x31   :  { %v468_v37 = vcombine.high %v71_v31, %v75_v32  ;;  %v467_v39 = vcombine.low %v71_v31, %v75_v32  ;;  %v421_v41 = vmul.f32 %v481_v40, %v459_v25  ;;  %v422_v42 = vmul.f32 %v481_v40, %v460_v27  ;;  %p562_p5 = pnand %p561_p4, %p555_p1 }
  0x32   :  { %183 = vmatpush1.bf16.msra.mxu0 %v461_v20  ;;  %226 = vmatpush1.bf16.msra.mxu1 %v463_v24 }
  0x33   :  { %266 = vmatprep.subr.bf16.mxu0 %v474_v26  ;;  %309 = vmatprep.subr.bf16.mxu1 %v476_v28  ;;  %423 = vst.msk [vmem:[#allocation9] sm:$0xff] %vm164_vm0, %v421_v41  ;;  %424 = vst.msk [vmem:[#allocation9 + $0x8] sm:$0xff] %vm164_vm0, %v422_v42 }
  0x35   :  { %477 = vmatmul.mubr.msk.bf16.vlgmr.msra.gmra.mxu0 %vm164_vm0, %v67_v33  ;;  %478 = vmatmul.mubr.msk.bf16.vlgmr.msra.gmra.mxu1 %vm164_vm0, %v67_v33 }
  0x36   :  { %267 = vmatpush1.bf16.msra.mxu0 %v473_v34  ;;  %310 = vmatpush1.bf16.msra.mxu1 %v475_v35 }
  0x37   :  { %268 = vmatprep.subr.bf16.mxu0 %v466_v36  ;;  %311 = vmatprep.subr.bf16.mxu1 %v468_v37 }
  0x38   :  { %286 = vmatprep.mubr.bf16.mxu0 %v609_v0  ;;  %329 = vmatprep.mubr.bf16.mxu1 %v609_v0 }
  0x3a   :  { %269 = vmatpush1.bf16.msra.mxu0 %v465_v38  ;;  %312 = vmatpush1.bf16.msra.mxu1 %v467_v39 }
  0x3d   :  { %479 = vmatmul.mubr.msk.bf16.vlgmr.msra.gmra.mxu0 %vm164_vm0, %v67_v33  ;;  %480 = vmatmul.mubr.msk.bf16.vlgmr.msra.gmra.mxu1 %vm164_vm0, %v67_v33 }
  0x3e   :  { %565 = shalt.err (!%p562_p5)
}
  0x3f   :  { %448 = dma.vmem_to_hbm [thread:$0]  %s443_s12, 256, %s679_s5, [#allocation10], %s606_s28, %s606_s28, %s607_s29   ;;  %v342_v43 = vlaneseq  ;;  %v340_v46 = vld [vmem:[#allocation7] sm:$0xff] }
  0x40   :  { %s611_s5 = smov [#allocation8]  }
  0x41   :  { %v343_v44 = vshrl.u32 %v342_v43, 7  ;;  %s430_s15 = sshll.u32 %s611_s5, 4  ;;  %s431_s15 = int_to_ptr.vmem [resolvable:$true] %s430_s15 }
  0x42   :  { %s574_s16 = scalar_lea.vmem %s431_s15, 2048  ;;  %p579_p7 = scmp.lt.s32.totalorder %s431_s15, %s431_s15 }
  0x43   :  { %v344_v45 = vsub.s32 0, %v343_v44  ;;  %v352_v47 = vsub.s32 2, %v343_v44  ;;  %v348_v48 = vsub.s32 1, %v343_v44  ;;  %v356_v49 = vsub.s32 3, %v343_v44  ;;  %p575_p6 = scmp.ne.s32.totalorder %s431_s15, %s574_s16  ;;  %p580_p8 = scmp.lt.s32.totalorder %s574_s16, %s574_s16 }
  0x44   :  { %v360_v57 = vsub.s32 4, %v343_v44  ;;  %v368_v60 = vsub.s32 6, %v343_v44  ;;  %v364_v63 = vsub.s32 5, %v343_v44  ;;  %v372_v2 = vsub.s32 7, %v343_v44 }
  0x45   :  { %v345_v50 = vrot.slane %v340_v46, %v344_v45  ;;  %v353_v51 = vrot.slane %v340_v46, %v352_v47  ;;  %v349_v52 = vrot.slane %v340_v46, %v348_v48  ;;  %v357_v54 = vrot.slane %v340_v46, %v356_v49  ;;  %p581_p9 = por %p580_p8, %p579_p7 }
  0x46   :  { %v361_v5 = vrot.slane %v340_v46, %v360_v57  ;;  %v369_v8 = vrot.slane %v340_v46, %v368_v60  ;;  %v365_v11 = vrot.slane %v340_v46, %v364_v63  ;;  %v373_v14 = vrot.slane %v340_v46, %v372_v2 }
  0x47   :  { %p582_p10 = pnand %p581_p9, %p575_p6 }
  0xf5   :  { %v202_v53 = vpop.f32.mrf.mxu0  ;;  %v245_v56 = vpop.f32.mrf.mxu1 }
  0xf6   :  { %v382_v55 = vmul.f32 %v345_v50, %v202_v53  ;;  %v384_v58 = vmul.f32 %v353_v51, %v245_v56 }
  0xf7   :  { %v204_v59 = vpop.f32.mrf.mxu0  ;;  %v247_v62 = vpop.f32.mrf.mxu1 }
  0xf8   :  { %398 = vst [vmem:[#allocation8] sm:$0xff] %v382_v55  ;;  %v383_v61 = vmul.f32 %v349_v52, %v204_v59  ;;  %400 = vst [vmem:[#allocation8 + $0x10] sm:$0xff] %v384_v58  ;;  %v385_v0 = vmul.f32 %v357_v54, %v247_v62 }
  0xf9   :  { %v206_v1 = vpop.f32.mrf.mxu0  ;;  %v249_v4 = vpop.f32.mrf.mxu1 }
  0xfa   :  { %399 = vst [vmem:[#allocation8 + $0x8] sm:$0xff] %v383_v61  ;;  %v390_v3 = vmul.f32 %v345_v50, %v206_v1  ;;  %401 = vst [vmem:[#allocation8 + $0x18] sm:$0xff] %v385_v0  ;;  %v392_v6 = vmul.f32 %v353_v51, %v249_v4 }
  0xfb   :  { %v208_v7 = vpop.f32.mrf.mxu0  ;;  %v251_v10 = vpop.f32.mrf.mxu1 }
  0xfc   :  { %406 = vst [vmem:[#allocation8 + $0x40] sm:$0xff] %v390_v3  ;;  %v391_v9 = vmul.f32 %v349_v52, %v208_v7  ;;  %408 = vst [vmem:[#allocation8 + $0x50] sm:$0xff] %v392_v6  ;;  %v393_v12 = vmul.f32 %v357_v54, %v251_v10 }
  0xfd   :  { %v288_v13 = vpop.f32.mrf.mxu0  ;;  %v331_v16 = vpop.f32.mrf.mxu1 }
  0xfe   :  { %407 = vst [vmem:[#allocation8 + $0x48] sm:$0xff] %v391_v9  ;;  %v386_v15 = vmul.f32 %v361_v5, %v288_v13  ;;  %409 = vst [vmem:[#allocation8 + $0x58] sm:$0xff] %v393_v12  ;;  %v388_v17 = vmul.f32 %v369_v8, %v331_v16 }
  0xff   :  { %v290_v18 = vpop.f32.mrf.mxu0  ;;  %v333_v20 = vpop.f32.mrf.mxu1 }
 0x100   :  { %402 = vst [vmem:[#allocation8 + $0x20] sm:$0xff] %v386_v15  ;;  %v387_v19 = vmul.f32 %v365_v11, %v290_v18  ;;  %404 = vst [vmem:[#allocation8 + $0x30] sm:$0xff] %v388_v17  ;;  %v389_v21 = vmul.f32 %v373_v14, %v333_v20 }
 0x101   :  { %v292_v22 = vpop.f32.mrf.mxu0  ;;  %v335_v24 = vpop.f32.mrf.mxu1 }
 0x102   :  { %403 = vst [vmem:[#allocation8 + $0x28] sm:$0xff] %v387_v19  ;;  %v394_v23 = vmul.f32 %v361_v5, %v292_v22  ;;  %405 = vst [vmem:[#allocation8 + $0x38] sm:$0xff] %v389_v21  ;;  %v396_v25 = vmul.f32 %v369_v8, %v335_v24 }
 0x103   :  { %v294_v26 = vpop.f32.mrf.mxu0  ;;  %v337_v28 = vpop.f32.mrf.mxu1 }
 0x104   :  { %410 = vst [vmem:[#allocation8 + $0x60] sm:$0xff] %v394_v23  ;;  %v395_v27 = vmul.f32 %v365_v11, %v294_v26  ;;  %412 = vst [vmem:[#allocation8 + $0x70] sm:$0xff] %v396_v25  ;;  %v397_v29 = vmul.f32 %v373_v14, %v337_v28 }
 0x106   :  { %411 = vst [vmem:[#allocation8 + $0x68] sm:$0xff] %v395_v27  ;;  %413 = vst [vmem:[#allocation8 + $0x78] sm:$0xff] %v397_v29 }
 0x107   :  { %585 = shalt.err (!%p582_p10)
}
 0x108   :  { %s612_s17 = smov 1024   ;;  %s613_s18 = smov 64  }
 0x109   :  { %436 = dma.vmem_to_hbm [thread:$0]  %s431_s15, 2048, %s678_s4, [#allocation4], %s612_s17, %s612_s17, %s613_s18  }
 0x10a   :  { %598 = dma.done.wait [#allocation4], 2048  }
 0x10b   :  { %599 = vsyncadd [#allocation4], 4294965248 }
 0x10c   :  { %600 = dma.done.wait [#allocation10], 256  }
 0x10d   :  { %601 = vsyncadd [#allocation10], 4294967040 }
 0x10e   :  { %455 = vsyncpa [#allocation3], 1 }
 0x10f   :  { %456 = vsyncpa [#allocation6], 1 }
 0x110   :  { %457 = vsyncpa [#allocation4], 1 }
 0x111   :  { %458 = vsyncpa [#allocation10], 1 }

</bundles_post_ra>
